<compile_context>
chip_gen: v7x
topology: tpu7x:2x2x1
jax: 0.10.0
libtpu: 0.0.40
codegen_flags: <defaults>
</compile_context>

<pallas_src>
import functools

import jax
import jax.numpy as jnp
from jax import lax
from jax.experimental import pallas as pl
from jax.experimental.pallas import tpu as pltpu


def _tensorcores_per_chip():
    """Best-effort TensorCores-per-chip (dual-TC: v4/v5p megacore, v7x)."""
    try:
        kind = jax.devices()[0].device_kind.lower()
    except Exception:
        return 1
    if any(t in kind for t in ("lite", "v5e", "v6e", "v2", "v3")):
        return 1
    if any(t in kind for t in ("v7", "v5p", "v4")):
        return 2
    return 1  # safe default: serial, no duplicated tiles


def _choose_rows(n_rows, lane_elems, itemsize, target_bytes):
    """Rows per tile: ~target_bytes per input buffer, multiple of 8."""
    rows = target_bytes // max(1, lane_elems * itemsize)
    rows = max(8, (rows // 8) * 8)
    rows_cap = pl.cdiv(n_rows, 8) * 8          # never bigger than needed
    return int(min(rows, rows_cap))


def _heatmap_mse_kernel(*refs, apply_weight, n_rows, rows_per_tile,
                        tiles_per_split, inv_denom, needs_mask):
    """Grid = (num_splits, tiles_per_split).

    refs (apply_weight=True):  w2_ref, pred_ref, tgt_ref, out_ref, acc_ref
    refs (apply_weight=False):          pred_ref, tgt_ref, out_ref, acc_ref

    w2_ref   : (N_grid, 1) f32 VMEM  -- resident squared weight column
    pred_ref : (rows, L)   native-dtype VMEM tile
    tgt_ref  : (rows, L)   native-dtype VMEM tile
    out_ref  : (1, 1)      f32 SMEM  -- per-split partial loss
    acc_ref  : (8, L)      f32 VMEM  -- vector accumulator (resident across r)
    """
    if apply_weight:
        w2_ref, pred_ref, tgt_ref, out_ref, acc_ref = refs
    else:
        pred_ref, tgt_ref, out_ref, acc_ref = refs

    c = pl.program_id(0)   # split index (maps to a TensorCore on dual-TC chips)
    r = pl.program_id(1)   # row-tile index within this split

    @pl.when(r == 0)
    def _():
        acc_ref[...] = jnp.zeros_like(acc_ref)

    # bf16 (or other) transport; f32 arithmetic (required on v5e, safe everywhere).
    diff = pred_ref[...].astype(jnp.float32) - tgt_ref[...].astype(jnp.float32)
    contrib = diff * diff                                     # (rows, L) f32, VPU only

    tile_idx = c * tiles_per_split + r
    row0 = tile_idx * rows_per_tile

    if apply_weight:
        # Resident (N_grid, 1) column, sliced at an 8-aligned sublane offset.
        row0_hint = pl.multiple_of(row0, rows_per_tile)
        w_col = w2_ref[pl.ds(row0_hint, rows_per_tile), :]    # (rows, 1) f32
        contrib = w_col * contrib

    def _fold(x):
        # Fold rows -> 8 sublanes with pure vreg adds (no per-step XLU reduce).
        return x.reshape(rows_per_tile // 8, 8, -1).sum(axis=0)

    if needs_mask:
        is_full = row0 + rows_per_tile <= n_rows

        @pl.when(is_full)
        def _():                                   # interior tiles: no mask cost
            acc_ref[...] += _fold(contrib)

        @pl.when(jnp.logical_not(is_full))
        def _():                                   # tail / duplicated tiles only
            # Select (not multiply) so stale NaN/Inf in padded rows never
            # reaches the accumulator.
            rid = lax.broadcasted_iota(jnp.int32, (rows_per_tile, 1), 0) + row0
            acc_ref[...] += _fold(jnp.where(rid < n_rows, contrib, 0.0))
    else:
        acc_ref[...] += _fold(contrib)

    @pl.when(r == pl.num_programs(1) - 1)
    def _():
        out_ref[0, 0] = jnp.sum(acc_ref[...]) * jnp.float32(inv_denom)


def heatmap_mse_loss(pred, target, target_weight=None, use_target_weight=True,
                     _rows_override=None, _num_splits_override=None):
    """JAX/Pallas equivalent of HeatmapMSELoss.forward.

    pred, target : (B, J, H, W) heatmaps (any float dtype; f32 math inside).
    target_weight: per-(b, j) weights, any shape reshapeable to (B*J, 1).
    """
    B, J, H, W = pred.shape
    N, L = B * J, H * W

    # Keep the native dtype on the wire (no wrapper f32 upcast); lane-dense view.
    pred2 = pred.reshape(N, L)
    tgt2 = target.reshape(N, L)

    apply_weight = bool(use_target_weight) and (target_weight is not None)

    itemsize = jnp.dtype(pred.dtype).itemsize
    cores = _tensorcores_per_chip()
    # Bigger tiles on single-TC chips (more VMEM headroom per core).
    target_bytes = (4 << 20) if cores > 1 else (6 << 20)
    rows = (_rows_override if _rows_override is not None
            else _choose_rows(N, L, itemsize, target_bytes))
    rows = max(8, (rows // 8) * 8)

    total_tiles = pl.cdiv(N, rows)
    num_splits = (_num_splits_override if _num_splits_override is not None
                  else cores)
    num_splits = max(1, min(int(num_splits), 2, total_tiles))
    tiles_per_split = pl.cdiv(total_tiles, num_splits)
    n_grid_rows = num_splits * tiles_per_split * rows
    needs_mask = n_grid_rows != N
    inv_denom = 1.0 / (float(B) * float(J) * float(H) * float(W))

    def data_map(c, r):
        # Clamp so duplicated tail tiles never DMA a fully out-of-range block;
        # their contribution is masked to zero inside the kernel.
        return (jnp.minimum(c * tiles_per_split + r, total_tiles - 1), 0)

    in_specs = [
        pl.BlockSpec((rows, L), data_map),       # pred tile (native dtype)
        pl.BlockSpec((rows, L), data_map),       # target tile (native dtype)
    ]
    operands = [pred2, tgt2]

    if apply_weight:
        wf = target_weight.astype(jnp.float32).reshape(N, 1)
        w2 = wf * wf
        if n_grid_rows != N:
            w2 = jnp.pad(w2, ((0, n_grid_rows - N), (0, 0)))
        # Resident across the whole grid: constant index_map, full-array block.
        in_specs.insert(0, pl.BlockSpec((n_grid_rows, 1), lambda c, r: (0, 0)))
        operands.insert(0, w2)

    # VMEM budget: streaming pred/tgt double-buffers + (lane-padded) resident
    # w2 + accumulator, with slack; clamp to a safe scoped-VMEM range.
    vmem_needed = (2 * 2 * rows * L * itemsize
                   + (2 * n_grid_rows * 128 * 4 if apply_weight else 0)
                   + 8 * L * 4)
    vmem_limit = int(min(max(vmem_needed + (8 << 20), 32 << 20), 64 << 20))

    kernel = functools.partial(
        _heatmap_mse_kernel,
        apply_weight=apply_weight, n_rows=N, rows_per_tile=rows,
        tiles_per_split=tiles_per_split, inv_denom=inv_denom,
        needs_mask=needs_mask)

    partials = pl.pallas_call(
        kernel,
        grid=(num_splits, tiles_per_split),
        in_specs=in_specs,
        out_specs=pl.BlockSpec((1, 1), lambda c, r: (c, 0),
                               memory_space=pltpu.MemorySpace.SMEM),
        out_shape=jax.ShapeDtypeStruct((num_splits, 1), jnp.float32),
        scratch_shapes=[pltpu.VMEM((8, L), jnp.float32)],
        compiler_params=pltpu.CompilerParams(
            dimension_semantics=("parallel", "arbitrary"),
            vmem_limit_bytes=vmem_limit),
    )(*operands)

    return jnp.sum(partials)


def _ref_loss(pred, target, target_weight, use_target_weight=True):
    B, J, H, W = pred.shape
    p = pred.astype(jnp.float32)
    t = target.astype(jnp.float32)
    if (target_weight is None) or (not use_target_weight):
        w2 = jnp.ones((B, J), jnp.float32)
    else:
        w2 = target_weight.astype(jnp.float32).reshape(B, J) ** 2
    return jnp.sum(w2[:, :, None, None] * (p - t) ** 2) / (B * J * H * W)


if __name__ == "__main__":
    key = jax.random.PRNGKey(0)
    k1, k2, k3, k4, k5, k6 = jax.random.split(key, 6)

    B, J, H, W = 2, 4, 16, 16
    pred = jax.random.normal(k1, (B, J, H, W), dtype=jnp.float32)
    target = jax.random.normal(k2, (B, J, H, W), dtype=jnp.float32)
    target_weight = jax.random.uniform(k3, (B, J), dtype=jnp.float32)

    # 1) f32, weighted
    loss = jax.block_until_ready(heatmap_mse_loss(pred, target, target_weight))
    ref = _ref_loss(pred, target, target_weight)
    assert jnp.allclose(loss, ref, rtol=1e-5, atol=1e-6), (loss, ref)

    # 2) bf16 transport (inputs stay bf16 in HBM, f32 math inside the kernel)
    pred_bf = pred.astype(jnp.bfloat16)
    tgt_bf = target.astype(jnp.bfloat16)
    loss_bf = jax.block_until_ready(heatmap_mse_loss(pred_bf, tgt_bf, target_weight))
    ref_bf = _ref_loss(pred_bf, tgt_bf, target_weight)
    assert jnp.allclose(loss_bf, ref_bf, rtol=1e-3, atol=1e-5), (loss_bf, ref_bf)

    # 3) default-weight path (target_weight=None -> torch.ones); no w2 input at all
    loss_nw = jax.block_until_ready(heatmap_mse_loss(pred, target, None))
    ref_nw = jnp.mean((pred - target) ** 2)
    assert jnp.allclose(loss_nw, ref_nw, rtol=1e-5, atol=1e-6), (loss_nw, ref_nw)

    # 4) use_target_weight=False ignores provided weights
    loss_uw = jax.block_until_ready(
        heatmap_mse_loss(pred, target, target_weight, use_target_weight=False))
    assert jnp.allclose(loss_uw, ref_nw, rtol=1e-5, atol=1e-6), (loss_uw, ref_nw)

    # 5) multi-tile + ragged tail + 2-way split (exercises the pl.when-gated
    #    select mask and the clamped duplicated tile), weighted
    B2, J2, H2, W2 = 1, 17, 8, 8
    p2 = jax.random.normal(k4, (B2, J2, H2, W2), dtype=jnp.float32)
    t2 = jax.random.normal(k5, (B2, J2, H2, W2), dtype=jnp.float32)
    w2_ = jax.random.uniform(k6, (B2, J2), dtype=jnp.float32)
    loss_m = jax.block_until_ready(
        heatmap_mse_loss(p2, t2, w2_, _rows_override=8, _num_splits_override=2))
    ref_m = _ref_loss(p2, t2, w2_)
    assert jnp.allclose(loss_m, ref_m, rtol=1e-5, atol=1e-6), (loss_m, ref_m)

    # 6) multi-tile + ragged tail, no-weight path
    loss_m2 = jax.block_until_ready(
        heatmap_mse_loss(p2, t2, None, _rows_override=8))
    ref_m2 = jnp.mean((p2 - t2) ** 2)
    assert jnp.allclose(loss_m2, ref_m2, rtol=1e-5, atol=1e-6), (loss_m2, ref_m2)

    print("KERNEL_OK")
</pallas_src>

<mosaic_0001>
module attributes {stable_mosaic.version = 11 : i64} {
  func.func @_heatmap_mse_kernel(%arg0: i32, %arg1: i32, %arg2: memref<8x1xf32, #tpu.memory_space<vmem>>, %arg3: memref<8x256xf32, #tpu.memory_space<vmem>>, %arg4: memref<8x256xf32, #tpu.memory_space<vmem>>, %arg5: memref<1x1xf32, #tpu.memory_space<smem>>, %arg6: memref<8x256xf32, #tpu.memory_space<vmem>>) attributes {dimension_semantics = [#tpu.dimension_semantics<parallel>, #tpu.dimension_semantics<arbitrary>], iteration_bounds = array<i64: 1, 1>, scalar_prefetch = 0 : i64, scratch_operands = 1 : i64, tpu.core_type = #tpu.core_type<tc>, window_params = [{pipeline_mode = #tpu.pipeline_mode<synchronous>, transform_indices = @transform_0, window_bounds = array<i64: 8, 1>}, {transform_indices = @transform_1, window_bounds = array<i64: 8, 256>}, {transform_indices = @transform_2, window_bounds = array<i64: 8, 256>}, {transform_indices = @transform_3, window_bounds = array<i64: 1, 1>}]} {
    %c0_i32 = arith.constant 0 : i32
    %0 = arith.cmpi eq, %arg1, %c0_i32 : i32
    %1 = arith.extui %0 : i1 to i32
    %c0_i32_0 = arith.constant 0 : i32
    %2 = arith.cmpi ne, %1, %c0_i32_0 : i32
    scf.if %2 {
      %cst_11 = arith.constant 0.000000e+00 : f32
      %23 = vector.broadcast %cst_11 : f32 to vector<8x256xf32>
      %c0_12 = arith.constant 0 : index
      %c0_13 = arith.constant 0 : index
      %24 = vector.load %arg6[%c0_12, %c0_13] : memref<8x256xf32, #tpu.memory_space<vmem>>, vector<8x256xf32>
      tpu.vector_store %arg6[%c0_12, %c0_13], %23 {strides = array<i32>} : memref<8x256xf32, #tpu.memory_space<vmem>>, vector<8x256xf32>,
    } else {
    }
    %c0 = arith.constant 0 : index
    %c0_1 = arith.constant 0 : index
    %3 = vector.load %arg3[%c0, %c0_1] : memref<8x256xf32, #tpu.memory_space<vmem>>, vector<8x256xf32>
    %c0_2 = arith.constant 0 : index
    %c0_3 = arith.constant 0 : index
    %4 = vector.load %arg4[%c0_2, %c0_3] : memref<8x256xf32, #tpu.memory_space<vmem>>, vector<8x256xf32>
    %5 = arith.subf %3, %4 : vector<8x256xf32>
    %6 = arith.mulf %5, %5 : vector<8x256xf32>
    %c1_i32 = arith.constant 1 : i32
    %7 = arith.muli %arg0, %c1_i32 : i32
    %8 = arith.addi %7, %arg1 : i32
    %c8_i32 = arith.constant 8 : i32
    %9 = arith.muli %8, %c8_i32 : i32
    %10 = tpu.assume_multiple %9, 8 : i32
    %11 = arith.index_cast %10 : i32 to index
    %c0_4 = arith.constant 0 : index
    %12 = vector.load %arg2[%11, %c0_4] : memref<8x1xf32, #tpu.memory_space<vmem>>, vector<8x1xf32>
    %13 = vector.broadcast %12 : vector<8x1xf32> to vector<8x256xf32>
    %14 = arith.mulf %13, %6 : vector<8x256xf32>
    %c0_5 = arith.constant 0 : index
    %c0_6 = arith.constant 0 : index
    %15 = vector.load %arg6[%c0_5, %c0_6] : memref<8x256xf32, #tpu.memory_space<vmem>>, vector<8x256xf32>
    %16 = vector.shape_cast %14 : vector<8x256xf32> to vector<1x8x256xf32>
    %cst = arith.constant dense<0.000000e+00> : vector<8x256xf32>
    %17 = vector.multi_reduction <add>, %16, %cst [0] : vector<1x8x256xf32> to vector<8x256xf32>
    %18 = arith.addf %15, %17 : vector<8x256xf32>
    %c0_7 = arith.constant 0 : index
    %c0_8 = arith.constant 0 : index
    %19 = vector.load %arg6[%c0_7, %c0_8] : memref<8x256xf32, #tpu.memory_space<vmem>>, vector<8x256xf32>
    tpu.vector_store %arg6[%c0_7, %c0_8], %18 {strides = array<i32>} : memref<8x256xf32, #tpu.memory_space<vmem>>, vector<8x256xf32>,
    %c0_i32_9 = arith.constant 0 : i32
    %20 = arith.cmpi eq, %arg1, %c0_i32_9 : i32
    %21 = arith.extui %20 : i1 to i32
    %c0_i32_10 = arith.constant 0 : i32
    %22 = arith.cmpi ne, %21, %c0_i32_10 : i32
    scf.if %22 {
      %c0_11 = arith.constant 0 : index
      %c0_12 = arith.constant 0 : index
      %23 = vector.load %arg6[%c0_11, %c0_12] : memref<8x256xf32, #tpu.memory_space<vmem>>, vector<8x256xf32>
      %24 = vector.shape_cast %23 : vector<8x256xf32> to vector<1x8x256xf32>
      %cst_13 = arith.constant dense<0.000000e+00> : vector<1xf32>
      %25 = vector.multi_reduction <add>, %24, %cst_13 [1, 2] : vector<1x8x256xf32> to vector<1xf32>
      %26 = vector.shape_cast %25 : vector<1xf32> to vector<1x1x1xf32>
      %27 = vector.extract %26[0, 0, 0] : f32 from vector<1x1x1xf32>
      %cst_14 = arith.constant 4.8828125E-4 : f32
      %28 = arith.mulf %27, %cst_14 : f32
      %c0_15 = arith.constant 0 : index
      %c0_16 = arith.constant 0 : index
      %29 = memref.load %arg5[%c0_15, %c0_16] : memref<1x1xf32, #tpu.memory_space<smem>>
      memref.store %28, %arg5[%c0_15, %c0_16] : memref<1x1xf32, #tpu.memory_space<smem>>
    } else {
    }
    return
  }
  func.func @transform_0(%arg0: i32, %arg1: i32) -> (i32, i32) {
    %c0_i32 = arith.constant 0 : i32
    %c0_i32_0 = arith.constant 0 : i32
    %c0_i32_1 = arith.constant 0 : i32
    return %c0_i32, %c0_i32_0 : i32, i32
  }
  func.func @transform_1(%arg0: i32, %arg1: i32) -> (i32, i32) {
    %c1_i32 = arith.constant 1 : i32
    %0 = arith.muli %arg0, %c1_i32 : i32
    %1 = arith.addi %0, %arg1 : i32
    %c0_i32 = arith.constant 0 : i32
    %2 = arith.minsi %1, %c0_i32 : i32
    %c0_i32_0 = arith.constant 0 : i32
    %c0_i32_1 = arith.constant 0 : i32
    return %2, %c0_i32_0 : i32, i32
  }
  func.func @transform_2(%arg0: i32, %arg1: i32) -> (i32, i32) {
    %c1_i32 = arith.constant 1 : i32
    %0 = arith.muli %arg0, %c1_i32 : i32
    %1 = arith.addi %0, %arg1 : i32
    %c0_i32 = arith.constant 0 : i32
    %2 = arith.minsi %1, %c0_i32 : i32
    %c0_i32_0 = arith.constant 0 : i32
    %c0_i32_1 = arith.constant 0 : i32
    return %2, %c0_i32_0 : i32, i32
  }
  func.func @transform_3(%arg0: i32, %arg1: i32) -> (i32, i32) {
    %c0_i32 = arith.constant 0 : i32
    %c0_i32_0 = arith.constant 0 : i32
    return %arg0, %c0_i32 : i32, i32
  }
}

</mosaic_0001>

<bundles_post_ra>
// kernel: tpu_custom_call.1
= control target key start
LH: loop header
LB: loop body
LE: loop exit
PB: predicated region body
PF: predicated region fallthrough
CT: control target
= control target key end

     0   :  { %8 = vsyncpa [#allocation4], 0  ;;  %s237_s0 = inlined_call_operand.vmem [shape: f32[8,1], index: 0, kind: input, shape index: {}]   ;;  %s238_s1 = inlined_call_operand.hbm [shape: f32[8,256], index: 1, kind: input, shape index: {}]   ;;  %s239_s2 = inlined_call_operand.vmem [shape: f32[8,256], index: 2, kind: input, shape index: {}]   ;;  %s240_s3 = inlined_call_operand.hbm [shape: f32[1,1], index: 3, kind: output, shape index: {}]  }
   0x1   :  { %9 = vsyncpa [#allocation5], 0  ;;  %s181_s12 = smov [#allocation3]   ;;  %s145_s16 = scalar_lea.hbm %s238_s1, 256 }
   0x2   :  { %s24_s13 = sshll.u32 %s181_s12, 4  ;;  %p146_p0 = scmp.ne.s32.totalorder %s238_s1, %s145_s16  ;;  %s25_s13 = int_to_ptr.vmem [resolvable:$true] %s24_s13 }
   0x3   :  { %p149_p1 = scmp.lt.u32.totalorder %s145_s16, %s238_s1 }
   0x5   :  { %p151_p2 = pnand %p149_p1, %p146_p0 }
   0x7   :  { %154 = shalt.err (!%p151_p2)
}
   0x8   :  { %s155_s21 = scalar_lea.vmem %s25_s13, 256  ;;  %p160_p4 = scmp.lt.s32.totalorder %s25_s13, %s25_s13 }
   0x9   :  { %p156_p3 = scmp.ne.s32.totalorder %s25_s13, %s155_s21  ;;  %p161_p5 = scmp.lt.s32.totalorder %s155_s21, %s155_s21 }
   0xb   :  { %p162_p6 = por %p161_p5, %p160_p4 }
   0xd   :  { %p163_p7 = pnand %p162_p6, %p156_p3 }
   0xf   :  { %166 = shalt.err (!%p163_p7)
}
  0x10   :  { %27 = dma.hbm_to_vmem [thread:$0]  %s238_s1, 256, %s25_s13, [#allocation4]  }
  0x11   :  { %177 = dma.done.wait [#allocation4], 256  }
  0x12   :  { %178 = vsyncadd [#allocation4], 4294967040  ;;  %v182_v0 = vmov 0   ;;  %v83_v1 = vld [vmem:[%s237_s0] sm:$0xff]  ;;  %v72_v2 = vld [vmem:[#allocation3] sm:$0xff]  ;;  %s167_s4 = scalar_lea.hbm %s240_s3, 16 }
  0x13   :  { %144 = vset.pattern.permute.xlu0 %v182_v0  ;;  %v73_v3 = vld [vmem:[#allocation3 + $0x8] sm:$0xff]  ;;  %v75_v5 = vld [vmem:[%s239_s2 + $0x8] sm:$0xff]  ;;  %p168_p8 = scmp.ne.s32.totalorder %s240_s3, %s167_s4  ;;  %p171_p9 = scmp.lt.u32.totalorder %s167_s4, %s240_s3 }
  0x14   :  { %86 = vperm.xlu0 %144, %v83_v1   ;;  %v74_v4 = vld [vmem:[%s239_s2] sm:$0xff]  ;;  %v77_v7 = vsub.f32 %v73_v3, %v75_v5 }
  0x15   :  { %v76_v6 = vsub.f32 %v72_v2, %v74_v4  ;;  %p173_p10 = pnand %p171_p9, %p168_p8 }
  0x16   :  { %v79_v9 = vmul.f32 %v77_v7, %v77_v7 }
  0x17   :  { %v78_v8 = vmul.f32 %v76_v6, %v76_v6 }
  0x93   :  { %v87_v10 = vpop.permute.xlu0 %86 }
  0x94   :  { %v89_v11 = vmul.f32 %v87_v10, %v78_v8  ;;  %v90_v12 = vmul.f32 %v87_v10, %v79_v9 }
  0x96   :  { %v104_v13 = vadd.f32 %v90_v12, %v89_v11 }
  0x98   :  { %105 = vadd.xlane.f32.xlu0 %v104_v13 }
 0x125   :  { %v106_v14 = vpop.xlane.xlu0 %105 }
 0x126   :  { %v107_v15 = vrot.slane %v106_v14, 4 }
 0x128   :  { %v108_v16 = vadd.f32 %v107_v15, %v106_v14 }
 0x12a   :  { %v109_v17 = vrot.slane %v108_v16, 2 }
 0x12c   :  { %v110_v18 = vadd.f32 %v109_v17, %v108_v16 }
 0x12e   :  { %v111_v19 = vrot.slane %v110_v18, 1 }
 0x130   :  { %v112_v20 = vadd.f32 %v111_v19, %v110_v18 }
 0x132   :  { %139 = vpush %v112_v20 }
 0x163   :  { %s140_s0 = spop %139 }
 0x164   :  { %s114_s1 = smul.f32 0.00048828125, %s140_s0 }
 0x166   :  { %116 = sst [smem:[#allocation6]] %s114_s1 }
 0x167   :  { %176 = shalt.err (!%p173_p10)
}
 0x168   :  { %s183_s9 = smov [#allocation6]  }
 0x169   :  { %124 = dma.smem_to_hbm %s183_s9, 16, %s240_s3, [#allocation5]  }
 0x16a   :  { %179 = dma.done.wait [#allocation5], 16  }
 0x16b   :  { %180 = vsyncadd [#allocation5], 4294967280 }
 0x16c   :  { %128 = sfence }
 0x16d   :  { %129 = vsyncpa [#allocation4], 1 }
 0x16e   :  { %130 = vsyncpa [#allocation5], 1 }

</bundles_post_ra>
